<compile_context>
chip_gen: v5e
topology: v5e:2x2
jax: 0.10.0
libtpu: 0.0.40
codegen_flags: <defaults>
</compile_context>

<pallas_src>
import jax
import jax.numpy as jnp
from jax.experimental import pallas as pl
from jax.experimental.pallas import tpu as pltpu


def attflat_kernel(x_ref, bias_ref, w1_ref, b1_ref, w2_ref, b2_ref,
                   wm_ref, bm_ref, xatted_ref, attw_ref):
    TB, S, H = x_ref.shape
    G = w2_ref.shape[1]
    cdt = w1_ref.dtype                       # MXU input dtype (bf16 or f32)

    x = x_ref[...]                           # (TB, S, H) in compute dtype
    x2 = x.reshape(TB * S, H)                # free view (S % 8 == 0)

    # MLP over all TB*S rows at once: Linear(H->M) + ReLU, Linear(M->G).
    h = jnp.dot(x2, w1_ref[...], preferred_element_type=jnp.float32)
    h = jnp.maximum(h + b1_ref[...], 0.0)                         # (TB*S, M) f32
    att = jnp.dot(h.astype(cdt), w2_ref[...],
                  preferred_element_type=jnp.float32) + b2_ref[...]
    att = att.reshape(TB, S, G)                                   # (TB, S, G) f32

    # masked_fill(mask, -1e9): bias is 0 (keep) or -1e9 (masked), shape (TB, S).
    bias = bias_ref[...][:, :, None]                              # (TB, S, 1)
    att = jnp.where(bias == 0.0, att, bias)                       # exact replace

    # softmax over the sequence axis (PyTorch dim=1), exact reciprocal so the
    # returned att_w rows sum to 1.
    att = att - jnp.max(att, axis=1, keepdims=True)
    e = jnp.exp(att)
    denom = jnp.sum(e, axis=1, keepdims=True)                     # (TB, 1, G)
    att_sm = e * pl.reciprocal(denom, approx=False)               # (TB, S, G)

    # Lane-dense att_w store: one contiguous (TB, S*G) slab.
    attw_ref[...] = att_sm.reshape(TB, S * G).astype(attw_ref.dtype)

    # Glimpse-weighted sums (VPU; S is small) stacked to (TB, G*H), then a
    # single K=G*H merge matmul on the MXU.
    xf = x.astype(jnp.float32)
    glimpses = [jnp.sum(att_sm[:, :, g:g + 1] * xf, axis=1) for g in range(G)]
    flat = jnp.concatenate(glimpses, axis=-1)                     # (TB, G*H) f32
    out = jnp.dot(flat.astype(cdt), wm_ref[...],
                  preferred_element_type=jnp.float32) + bm_ref[...]
    xatted_ref[...] = out.astype(xatted_ref.dtype)


def _round_up(v, m):
    return -(-v // m) * m


def attflat(x, x_mask, w1, b1, w2, b2, wm, bm, *,
            batch_tile=512, min_grid_steps=2, compute_dtype=jnp.bfloat16):
    """x: (B, S, H); x_mask: (B, 1, 1, S) bool (True = masked), PyTorch layout."""
    B, S, H = x.shape
    M = w1.shape[1]
    G = w2.shape[1]
    F = wm.shape[1]
    assert wm.shape[0] == G * H

    # Mask as a compact 2-D f32 carrier: -1e9 where masked, 0 elsewhere.
    mask2d = x_mask.reshape(B, S)
    bias = jnp.where(mask2d, jnp.float32(-1000000000.0), jnp.float32(0.0))

    # Pad S to a multiple of 8 so in-kernel reshapes are sublane-aligned views.
    # Padded positions are marked masked (-1e9) so they get ~zero weight.
    Sp = _round_up(S, 8)
    if Sp != S:
        x = jnp.pad(x, ((0, 0), (0, Sp - S), (0, 0)))
        bias = jnp.pad(bias, ((0, 0), (0, Sp - S)),
                       constant_values=jnp.float32(-1000000000.0))

    # Batch tile: as large as allowed, but keep >= min_grid_steps steps for
    # v7x's 2 TensorCores when the batch is big enough; multi-step tiles must be
    # a multiple of 8 so the 2-D (TB, *) blocks satisfy the (8, 128) rule.
    TB = min(batch_tile, B)
    if B >= 8 * min_grid_steps:
        TB = min(TB, _round_up(B, min_grid_steps) // min_grid_steps)
    if TB < B:
        TB = max(8, (TB // 8) * 8)
    Bp = _round_up(B, TB)
    if Bp != B:
        x = jnp.pad(x, ((0, Bp - B), (0, 0), (0, 0)))
        bias = jnp.pad(bias, ((0, Bp - B), (0, 0)))

    cdt = jnp.dtype(compute_dtype)
    x = x.astype(cdt)
    w1c = w1.astype(cdt)
    w2c = w2.astype(cdt)
    wmc = wm.astype(cdt)
    b1f = b1.reshape(1, M).astype(jnp.float32)
    b2f = b2.reshape(1, G).astype(jnp.float32)
    bmf = bm.reshape(1, F).astype(jnp.float32)

    # Conservative VMEM estimate for the padded, double-buffered blocks.
    x_blk = TB * _round_up(Sp, 8) * _round_up(H, 128) * 4
    bias_blk = _round_up(TB, 8) * _round_up(Sp, 128) * 4
    attw_blk = _round_up(TB, 8) * _round_up(Sp * G, 128) * 4
    xat_blk = _round_up(TB, 8) * _round_up(F, 128) * 4
    w_blk = 4 * (_round_up(H, 8) * _round_up(M, 128)
                 + 8 * _round_up(M, 128)
                 + _round_up(M, 8) * _round_up(G, 128)
                 + 8 * _round_up(G, 128)
                 + _round_up(G * H, 8) * _round_up(F, 128)
                 + 8 * _round_up(F, 128))
    vmem_bytes = 2 * (x_blk + bias_blk + attw_blk + xat_blk + w_blk) + (4 << 20)
    vmem_bytes = int(min(max(vmem_bytes, 16 << 20), 100 << 20))

    full2 = lambda b: (0, 0)
    out_shape = (
        jax.ShapeDtypeStruct((Bp, F), jnp.float32),        # x_atted
        jax.ShapeDtypeStruct((Bp, Sp * G), jnp.float32),   # att_w (flattened)
    )
    x_atted, att_w_flat = pl.pallas_call(
        attflat_kernel,
        out_shape=out_shape,
        grid_spec=pltpu.PrefetchScalarGridSpec(
            num_scalar_prefetch=0,
            grid=(Bp // TB,),
            in_specs=[
                pl.BlockSpec((TB, Sp, H), lambda b: (b, 0, 0)),   # x
                pl.BlockSpec((TB, Sp), lambda b: (b, 0)),         # mask bias
                pl.BlockSpec((H, M), full2),                      # W1 (VMEM-resident)
                pl.BlockSpec((1, M), full2),                      # b1
                pl.BlockSpec((M, G), full2),                      # W2
                pl.BlockSpec((1, G), full2),                      # b2
                pl.BlockSpec((G * H, F), full2),                  # W_merge
                pl.BlockSpec((1, F), full2),                      # b_merge
            ],
            out_specs=[
                pl.BlockSpec((TB, F), lambda b: (b, 0)),
                pl.BlockSpec((TB, Sp * G), lambda b: (b, 0)),
            ],
        ),
        compiler_params=pltpu.CompilerParams(
            dimension_semantics=("parallel",),
            vmem_limit_bytes=vmem_bytes),
    )(x, bias, w1c, b1f, w2c, b2f, wmc, bmf)

    att_w = att_w_flat.reshape(Bp, Sp, G)[:B, :S, :]
    return x_atted[:B], att_w


def attflat_reference(x, x_mask, w1, b1, w2, b2, wm, bm):
    B, S, H = x.shape
    mask = x_mask.reshape(B, S, 1)
    h = jax.nn.relu(x @ w1 + b1[0])
    att = h @ w2 + b2[0]
    att = jnp.where(mask, -1000000000.0, att)
    att_sm = jax.nn.softmax(att, axis=1)
    g = jnp.einsum('bsg,bsh->bgh', att_sm, x)
    flat = g.reshape(B, -1)
    return flat @ wm + bm[0], att_sm


if __name__ == "__main__":
    # args: num_hid = hidden_size = 32, flat_mlp_size = 64,
    #       flat_glimpses = 2, flat_out_size = 64, dropout_rate = 0.0
    B, S, H = 2, 8, 32
    M, G, F = 64, 2, 64

    key = jax.random.PRNGKey(0)
    k = jax.random.split(key, 7)

    x = jax.random.normal(k[0], (B, S, H), dtype=jnp.float32)
    # x_mask in PyTorch layout (B, 1, 1, S); last two positions of batch 1 masked.
    x_mask = jnp.zeros((B, 1, 1, S), dtype=bool).at[1, 0, 0, S - 2:].set(True)

    # Deterministic synthetic parameters (stored as (in, out); PyTorch is (out, in)).
    w1 = jax.random.normal(k[1], (H, M), dtype=jnp.float32) * 0.1
    b1 = jax.random.normal(k[2], (1, M), dtype=jnp.float32) * 0.01
    w2 = jax.random.normal(k[3], (M, G), dtype=jnp.float32) * 0.1
    b2 = jax.random.normal(k[4], (1, G), dtype=jnp.float32) * 0.01
    wm = jax.random.normal(k[5], (G * H, F), dtype=jnp.float32) * 0.1
    bm = jax.random.normal(k[6], (1, F), dtype=jnp.float32) * 0.01

    ref_out, ref_att = attflat_reference(x, x_mask, w1, b1, w2, b2, wm, bm)

    # Default path: bf16 MXU inputs, f32 accumulation / softmax.
    x_atted, att_w = attflat(x, x_mask, w1, b1, w2, b2, wm, bm)
    jax.block_until_ready((x_atted, att_w))
    assert x_atted.shape == (B, F) and att_w.shape == (B, S, G)
    assert jnp.allclose(x_atted, ref_out, rtol=2e-2, atol=2e-2), \
        float(jnp.abs(x_atted - ref_out).max())
    assert jnp.allclose(att_w, ref_att, rtol=2e-2, atol=2e-2), \
        float(jnp.abs(att_w - ref_att).max())

    # Full-precision path: tight tolerance against the f32 reference.
    x_atted32, att_w32 = attflat(x, x_mask, w1, b1, w2, b2, wm, bm,
                                 compute_dtype=jnp.float32)
    jax.block_until_ready((x_atted32, att_w32))
    assert jnp.allclose(x_atted32, ref_out, rtol=2e-3, atol=2e-3), \
        float(jnp.abs(x_atted32 - ref_out).max())
    assert jnp.allclose(att_w32, ref_att, rtol=2e-3, atol=2e-3), \
        float(jnp.abs(att_w32 - ref_att).max())

    print("KERNEL_OK")
</pallas_src>

<mosaic_0001>
module attributes {stable_mosaic.version = 11 : i64} {
  func.func @attflat_kernel(%arg0: i32, %arg1: memref<2x8x32xbf16, #tpu.memory_space<vmem>>, %arg2: memref<2x8xf32, #tpu.memory_space<vmem>>, %arg3: memref<32x64xbf16, #tpu.memory_space<vmem>>, %arg4: memref<1x64xf32, #tpu.memory_space<vmem>>, %arg5: memref<64x2xbf16, #tpu.memory_space<vmem>>, %arg6: memref<1x2xf32, #tpu.memory_space<vmem>>, %arg7: memref<64x64xbf16, #tpu.memory_space<vmem>>, %arg8: memref<1x64xf32, #tpu.memory_space<vmem>>, %arg9: memref<2x64xf32, #tpu.memory_space<vmem>>, %arg10: memref<2x16xf32, #tpu.memory_space<vmem>>) attributes {dimension_semantics = [#tpu.dimension_semantics<parallel>], iteration_bounds = array<i64: 1>, scalar_prefetch = 0 : i64, scratch_operands = 0 : i64, tpu.core_type = #tpu.core_type<tc>, window_params = [{transform_indices = @transform_0, window_bounds = array<i64: 2, 8, 32>}, {transform_indices = @transform_1, window_bounds = array<i64: 2, 8>}, {pipeline_mode = #tpu.pipeline_mode<synchronous>, transform_indices = @transform_2, window_bounds = array<i64: 32, 64>}, {pipeline_mode = #tpu.pipeline_mode<synchronous>, transform_indices = @transform_3, window_bounds = array<i64: 1, 64>}, {pipeline_mode = #tpu.pipeline_mode<synchronous>, transform_indices = @transform_4, window_bounds = array<i64: 64, 2>}, {pipeline_mode = #tpu.pipeline_mode<synchronous>, transform_indices = @transform_5, window_bounds = array<i64: 1, 2>}, {pipeline_mode = #tpu.pipeline_mode<synchronous>, transform_indices = @transform_6, window_bounds = array<i64: 64, 64>}, {pipeline_mode = #tpu.pipeline_mode<synchronous>, transform_indices = @transform_7, window_bounds = array<i64: 1, 64>}, {transform_indices = @transform_8, window_bounds = array<i64: 2, 64>}, {transform_indices = @transform_9, window_bounds = array<i64: 2, 16>}]} {
    %c0 = arith.constant 0 : index
    %c0_0 = arith.constant 0 : index
    %c0_1 = arith.constant 0 : index
    %0 = vector.load %arg1[%c0, %c0_0, %c0_1] : memref<2x8x32xbf16, #tpu.memory_space<vmem>>, vector<2x8x32xbf16>
    %1 = vector.shape_cast %0 : vector<2x8x32xbf16> to vector<16x32xbf16>
    %c0_2 = arith.constant 0 : index
    %c0_3 = arith.constant 0 : index
    %2 = vector.load %arg3[%c0_2, %c0_3] : memref<32x64xbf16, #tpu.memory_space<vmem>>, vector<32x64xbf16>
    %cst = arith.constant dense<0.000000e+00> : vector<16x64xf32>
    %3 = tpu.matmul %1, %2, %cst {dimension_numbers = #tpu.dot_dimension_numbers<[1], [0], [0], [1], [0, 0, 1, 1], [], []>} : vector<16x32xbf16>, vector<32x64xbf16>, vector<16x64xf32> -> vector<16x64xf32>
    %c0_4 = arith.constant 0 : index
    %c0_5 = arith.constant 0 : index
    %4 = vector.load %arg4[%c0_4, %c0_5] : memref<1x64xf32, #tpu.memory_space<vmem>>, vector<1x64xf32>
    %5 = vector.broadcast %4 : vector<1x64xf32> to vector<16x64xf32>
    %6 = arith.addf %3, %5 : vector<16x64xf32>
    %cst_6 = arith.constant 0.000000e+00 : f32
    %7 = vector.broadcast %cst_6 : f32 to vector<16x64xf32>
    %8 = arith.maximumf %6, %7 : vector<16x64xf32>
    %9 = arith.truncf %8 : vector<16x64xf32> to vector<16x64xbf16>
    %c0_7 = arith.constant 0 : index
    %c0_8 = arith.constant 0 : index
    %10 = vector.load %arg5[%c0_7, %c0_8] : memref<64x2xbf16, #tpu.memory_space<vmem>>, vector<64x2xbf16>
    %cst_9 = arith.constant dense<0.000000e+00> : vector<16x2xf32>
    %11 = tpu.matmul %9, %10, %cst_9 {dimension_numbers = #tpu.dot_dimension_numbers<[1], [0], [0], [1], [0, 0, 1, 1], [], []>} : vector<16x64xbf16>, vector<64x2xbf16>, vector<16x2xf32> -> vector<16x2xf32>
    %c0_10 = arith.constant 0 : index
    %c0_11 = arith.constant 0 : index
    %12 = vector.load %arg6[%c0_10, %c0_11] : memref<1x2xf32, #tpu.memory_space<vmem>>, vector<1x2xf32>
    %13 = vector.broadcast %12 : vector<1x2xf32> to vector<16x2xf32>
    %14 = arith.addf %11, %13 : vector<16x2xf32>
    %15 = vector.shape_cast %14 : vector<16x2xf32> to vector<2x8x2xf32>
    %c0_12 = arith.constant 0 : index
    %c0_13 = arith.constant 0 : index
    %16 = vector.load %arg2[%c0_12, %c0_13] : memref<2x8xf32, #tpu.memory_space<vmem>>, vector<2x8xf32>
    %17 = vector.shape_cast %16 : vector<2x8xf32> to vector<2x8x1xf32>
    %cst_14 = arith.constant 0.000000e+00 : f32
    %18 = vector.broadcast %cst_14 : f32 to vector<2x8x1xf32>
    %19 = arith.cmpf oeq, %17, %18 : vector<2x8x1xf32>
    %20 = vector.shape_cast %19 : vector<2x8x1xi1> to vector<2x8x1xi1>
    %21 = vector.broadcast %20 : vector<2x8x1xi1> to vector<2x8x2xi1>
    %22 = vector.shape_cast %17 : vector<2x8x1xf32> to vector<2x8x1xf32>
    %23 = vector.broadcast %22 : vector<2x8x1xf32> to vector<2x8x2xf32>
    %24 = arith.select %21, %15, %23 : vector<2x8x2xi1>, vector<2x8x2xf32>
    %cst_15 = arith.constant dense<0xFF800000> : vector<2x2xf32>
    %25 = vector.multi_reduction <maximumf>, %24, %cst_15 [1] : vector<2x8x2xf32> to vector<2x2xf32>
    %26 = vector.shape_cast %25 : vector<2x2xf32> to vector<2x1x2xf32>
    %27 = vector.broadcast %26 : vector<2x1x2xf32> to vector<2x8x2xf32>
    %28 = arith.subf %24, %27 : vector<2x8x2xf32>
    %29 = math.exp %28 : vector<2x8x2xf32>
    %cst_16 = arith.constant dense<0.000000e+00> : vector<2x2xf32>
    %30 = vector.multi_reduction <add>, %29, %cst_16 [1] : vector<2x8x2xf32> to vector<2x2xf32>
    %31 = vector.shape_cast %30 : vector<2x2xf32> to vector<2x1x2xf32>
    %32 = tpu.reciprocal %31 : vector<2x1x2xf32> -> vector<2x1x2xf32>
    %33 = vector.broadcast %32 : vector<2x1x2xf32> to vector<2x8x2xf32>
    %34 = arith.mulf %29, %33 : vector<2x8x2xf32>
    %35 = vector.shape_cast %34 : vector<2x8x2xf32> to vector<2x16xf32>
    %c0_17 = arith.constant 0 : index
    %c0_18 = arith.constant 0 : index
    %36 = vector.load %arg10[%c0_17, %c0_18] : memref<2x16xf32, #tpu.memory_space<vmem>>, vector<2x16xf32>
    tpu.vector_store %arg10[%c0_17, %c0_18], %35 {strides = array<i32>} : memref<2x16xf32, #tpu.memory_space<vmem>>, vector<2x16xf32>,
    %37 = arith.extf %0 : vector<2x8x32xbf16> to vector<2x8x32xf32>
    %38 = vector.extract_strided_slice %34 {offsets = [0, 0, 0], sizes = [2, 8, 1], strides = [1, 1, 1]} : vector<2x8x2xf32> to vector<2x8x1xf32>
    %39 = vector.broadcast %38 : vector<2x8x1xf32> to vector<2x8x32xf32>
    %40 = arith.mulf %39, %37 : vector<2x8x32xf32>
    %cst_19 = arith.constant dense<0.000000e+00> : vector<2x32xf32>
    %41 = vector.multi_reduction <add>, %40, %cst_19 [1] : vector<2x8x32xf32> to vector<2x32xf32>
    %42 = vector.extract_strided_slice %34 {offsets = [0, 0, 1], sizes = [2, 8, 1], strides = [1, 1, 1]} : vector<2x8x2xf32> to vector<2x8x1xf32>
    %43 = vector.broadcast %42 : vector<2x8x1xf32> to vector<2x8x32xf32>
    %44 = arith.mulf %43, %37 : vector<2x8x32xf32>
    %cst_20 = arith.constant dense<0.000000e+00> : vector<2x32xf32>
    %45 = vector.multi_reduction <add>, %44, %cst_20 [1] : vector<2x8x32xf32> to vector<2x32xf32>
    %46 = tpu.concatenate %41, %45 in 1 : vector<2x32xf32>, vector<2x32xf32> -> vector<2x64xf32>
    %47 = arith.truncf %46 : vector<2x64xf32> to vector<2x64xbf16>
    %c0_21 = arith.constant 0 : index
    %c0_22 = arith.constant 0 : index
    %48 = vector.load %arg7[%c0_21, %c0_22] : memref<64x64xbf16, #tpu.memory_space<vmem>>, vector<64x64xbf16>
    %cst_23 = arith.constant dense<0.000000e+00> : vector<2x64xf32>
    %49 = tpu.matmul %47, %48, %cst_23 {dimension_numbers = #tpu.dot_dimension_numbers<[1], [0], [0], [1], [0, 0, 1, 1], [], []>} : vector<2x64xbf16>, vector<64x64xbf16>, vector<2x64xf32> -> vector<2x64xf32>
    %c0_24 = arith.constant 0 : index
    %c0_25 = arith.constant 0 : index
    %50 = vector.load %arg8[%c0_24, %c0_25] : memref<1x64xf32, #tpu.memory_space<vmem>>, vector<1x64xf32>
    %51 = vector.broadcast %50 : vector<1x64xf32> to vector<2x64xf32>
    %52 = arith.addf %49, %51 : vector<2x64xf32>
    %c0_26 = arith.constant 0 : index
    %c0_27 = arith.constant 0 : index
    %53 = vector.load %arg9[%c0_26, %c0_27] : memref<2x64xf32, #tpu.memory_space<vmem>>, vector<2x64xf32>
    tpu.vector_store %arg9[%c0_26, %c0_27], %52 {strides = array<i32>} : memref<2x64xf32, #tpu.memory_space<vmem>>, vector<2x64xf32>,
    return
  }
  func.func @transform_0(%arg0: i32) -> (i32, i32, i32) {
    %c0_i32 = arith.constant 0 : i32
    %c0_i32_0 = arith.constant 0 : i32
    %c0_i32_1 = arith.constant 0 : i32
    return %arg0, %c0_i32, %c0_i32_0 : i32, i32, i32
  }
  func.func @transform_1(%arg0: i32) -> (i32, i32) {
    %c0_i32 = arith.constant 0 : i32
    %c0_i32_0 = arith.constant 0 : i32
    return %arg0, %c0_i32 : i32, i32
  }
  func.func @transform_2(%arg0: i32) -> (i32, i32) {
    %c0_i32 = arith.constant 0 : i32
    %c0_i32_0 = arith.constant 0 : i32
    %c0_i32_1 = arith.constant 0 : i32
    return %c0_i32, %c0_i32_0 : i32, i32
  }
  func.func @transform_3(%arg0: i32) -> (i32, i32) {
    %c0_i32 = arith.constant 0 : i32
    %c0_i32_0 = arith.constant 0 : i32
    %c0_i32_1 = arith.constant 0 : i32
    return %c0_i32, %c0_i32_0 : i32, i32
  }
  func.func @transform_4(%arg0: i32) -> (i32, i32) {
    %c0_i32 = arith.constant 0 : i32
    %c0_i32_0 = arith.constant 0 : i32
    %c0_i32_1 = arith.constant 0 : i32
    return %c0_i32, %c0_i32_0 : i32, i32
  }
  func.func @transform_5(%arg0: i32) -> (i32, i32) {
    %c0_i32 = arith.constant 0 : i32
    %c0_i32_0 = arith.constant 0 : i32
    %c0_i32_1 = arith.constant 0 : i32
    return %c0_i32, %c0_i32_0 : i32, i32
  }
  func.func @transform_6(%arg0: i32) -> (i32, i32) {
    %c0_i32 = arith.constant 0 : i32
    %c0_i32_0 = arith.constant 0 : i32
    %c0_i32_1 = arith.constant 0 : i32
    return %c0_i32, %c0_i32_0 : i32, i32
  }
  func.func @transform_7(%arg0: i32) -> (i32, i32) {
    %c0_i32 = arith.constant 0 : i32
    %c0_i32_0 = arith.constant 0 : i32
    %c0_i32_1 = arith.constant 0 : i32
    return %c0_i32, %c0_i32_0 : i32, i32
  }
  func.func @transform_8(%arg0: i32) -> (i32, i32) {
    %c0_i32 = arith.constant 0 : i32
    %c0_i32_0 = arith.constant 0 : i32
    return %arg0, %c0_i32 : i32, i32
  }
  func.func @transform_9(%arg0: i32) -> (i32, i32) {
    %c0_i32 = arith.constant 0 : i32
    %c0_i32_0 = arith.constant 0 : i32
    return %arg0, %c0_i32 : i32, i32
  }
}

</mosaic_0001>

<bundles_post_ra>
// kernel: tpu_custom_call.1
= control target key start
LH: loop header
LB: loop body
LE: loop exit
PB: predicated region body
PF: predicated region fallthrough
CT: control target
= control target key end

     0   :  { %15 = vsyncpa [#allocation3], 0  ;;  %s888_s0 = inlined_call_operand.hbm [shape: bf16[2,8,32], index: 0, kind: input, shape index: {}]   ;;  %s889_s1 = inlined_call_operand.hbm [shape: f32[2,8], index: 1, kind: input, shape index: {}]   ;;  %s890_s2 = inlined_call_operand.hbm [shape: bf16[32,64], index: 2, kind: input, shape index: {}]   ;;  %s891_s3 = inlined_call_operand.vmem [shape: f32[1,64], index: 3, kind: input, shape index: {}]   ;;  %s892_s4 = inlined_call_operand.vmem [shape: bf16[64,2], index: 4, kind: input, shape index: {}]   ;;  %s893_s5 = inlined_call_operand.vmem [shape: f32[1,2], index: 5, kind: input, shape index: {}]   ;;  %s894_s6 = inlined_call_operand.vmem [shape: bf16[64,64], index: 6, kind: input, shape index: {}]   ;;  %s895_s7 = inlined_call_operand.vmem [shape: f32[1,64], index: 7, kind: input, shape index: {}]   ;;  %s896_s8 = inlined_call_operand.hbm [shape: f32[2,64], index: 8, kind: output, shape index: {0}]   ;;  %s897_s9 = inlined_call_operand.hbm [shape: f32[2,16], index: 9, kind: output, shape index: {1}]  }
   0x1   :  { %16 = vsyncpa [#allocation6], 0 }
   0x2   :  { %17 = vsyncpa [#allocation4], 0  ;;  %s37_s11 = sshll.u32 %s889_s1, 4  ;;  %s38_s11 = int_to_ptr.hbm [resolvable:$true] %s37_s11 }
   0x3   :  { %18 = vsyncpa [#allocation10], 0  ;;  %s737_s12 = smov [#allocation5]   ;;  %s23_s16 = sshll.u32 %s888_s0, 4  ;;  %s24_s16 = int_to_ptr.hbm [resolvable:$true] %s23_s16 }
   0x4   :  { %s39_s13 = sshll.u32 %s737_s12, 4  ;;  %s738_s17 = smov [#allocation2]   ;;  %s40_s13 = int_to_ptr.vmem [resolvable:$true] %s39_s13 }
   0x5   :  { %42 = dma.hbm_to_vmem [thread:$0]  %s38_s11, 32, %s40_s13, [#allocation6]  }
   0x6   :  { %s25_s18 = sshll.u32 %s738_s17, 4  ;;  %s739_s19 = smov 64   ;;  %s26_s18 = int_to_ptr.vmem [resolvable:$true] %s25_s18 }
   0x7   :  { %s740_s20 = smov 4   ;;  %s47_s22 = sshll.u32 %s890_s2, 4  ;;  %s48_s22 = int_to_ptr.hbm [resolvable:$true] %s47_s22 }
   0x8   :  { %31 = dma.hbm_to_vmem [thread:$0]  %s24_s16, 128, %s26_s18, [#allocation3], %s739_s19, %s739_s19, %s740_s20  }
   0x9   :  { %s741_s23 = smov [#allocation7]  }
   0xa   :  { %s49_s24 = sshll.u32 %s741_s23, 4  ;;  %s50_s24 = int_to_ptr.vmem [resolvable:$true] %s49_s24 }
   0xb   :  { %55 = dma.hbm_to_vmem [thread:$0]  %s48_s22, 256, %s50_s24, [#allocation6], %s739_s19, %s739_s19, %s740_s20  }
   0xc   :  { %729 = dma.done.wait [#allocation3], 128  }
   0xd   :  { %730 = vsyncadd [#allocation3], 4294967168 }
   0xe   :  { %731 = dma.done.wait [#allocation6], 288  }
   0xf   :  { %732 = vsyncadd [#allocation6], 4294967008  ;;  %v567_v0 = vld [vmem:[#allocation7 + $0x8] sm:$0xff]  ;;  %v566_v1 = vld [vmem:[#allocation7] sm:$0xff]  ;;  %vm106_vm0 = vcmask 261120   ;;  %v183_v6 = vlaneseq  ;;  %vm163_vm1 = vcmask 523264  }
  0x10   :  { %116 = vmatpush.bf16.msra.mxu0 %v567_v0  ;;  %v565_v2 = vld [vmem:[#allocation2] sm:$0xff]  ;;  %v571_v3 = vld [vmem:[%s892_s4 + $0x18] sm:$0xff]  ;;  %v570_v4 = vld [vmem:[%s892_s4 + $0x10] sm:$0xff]  ;;  %vm204_vm3 = vcmask 15360   ;;  %v742_v41 = vmov 1   ;;  %v743_v42 = vmov 0  }
  0x11   :  { %171 = vmatpush.bf16.msra.mxu1 %v571_v3  ;;  %v569_v5 = vld [vmem:[%s892_s4 + $0x8] sm:$0xff]  ;;  %v184_v7 = vshrl.u32 %v183_v6, 7  ;;  %v568_v8 = vld [vmem:[%s892_s4] sm:$0xff]  ;;  %595 = vset.pattern.permute.xlu1 %v742_v41  ;;  %vm270_vm13 = vcmask 1047556   ;;  %s748_s13 = smov 8   ;;  %s749_s14 = smov 14  }
  0x12   :  { %v181_v9 = vld [vmem:[#allocation5] sm:$0x3]  ;;  %v598_v13 = vld [vmem:[%s891_s3] ss:$0 sm:$0xff]  ;;  %596 = vset.pattern.permute.xlu2 %v743_v42  ;;  %s746_s3 = smov 2   ;;  %vm419_vm14 = vcmask 1041409  }
  0x13   :  { %594 = vset.pattern.permute.xlu0 %v184_v7  ;;  %v182_v10 = vperm.slane %v181_v9, 0  ;;  %v189_v11 = vperm.slane %v181_v9, 1  ;;  %v599_v21 = vld [vmem:[%s893_s5] ss:$0 sm:$0xff]  ;;  %s747_s5 = smov 10   ;;  %s750_s21 = smov 32  }
  0x14   :  { %117 = vmatpush.bf16.msra.mxu0 %v566_v1  ;;  %s751_s1 = smov 6   ;;  %s752_s22 = smov 12   ;;  %vm351_vm15 = vcmask 31744  }
  0x15   :  { %172 = vmatpush.bf16.msra.mxu1 %v570_v4  ;;  %s502_s26 = sshll.u32 %s897_s9, 4  ;;  %s754_s29 = smov [#allocation8]   ;;  %s503_s26 = int_to_ptr.hbm [resolvable:$true] %s502_s26 }
  0x16   :  { %s489_s30 = sshll.u32 %s754_s29, 4  ;;  %s491_s4 = sshll.u32 %s896_s8, 4  ;;  %s490_s30 = int_to_ptr.vmem [resolvable:$true] %s489_s30  ;;  %s492_s4 = int_to_ptr.hbm [resolvable:$true] %s491_s4 }
  0x17   :  { %530 = vmatmul.msk.bf16.vlgmr.msra.gmra.mxu0 %vm106_vm0, %v565_v2 }
  0x19   :  { %173 = vmatpush.bf16.msra.mxu1 %v569_v5 }
  0x1b   :  { %187 = vperm.xlu0 %594, %v182_v10   ;;  %v744_v10 = vmov 1983009808  }
  0x1d   :  { %174 = vmatpush.bf16.msra.mxu1 %v568_v8 }
  0x23   :  { %194 = vperm.xlu0 %594, %v189_v11   ;;  %v273_v11 = vunpack.c.l.s4 %v744_v10 }
  0x2b   :  { %597 = vset.pattern.permute.xlu0 %v742_v41 }
  0x8d   :  { %v188_v20 = vpop.permute.xlu0 %187 }
  0x8e   :  { %vm196_vm2 = vcmp.eq.f32.partialorder %v188_v20, 0.0 }
  0x94   :  { %v119_v12 = vpop.f32.mrf.mxu0 }
  0x95   :  { %v120_v14 = vadd.f32 %v598_v13, %v119_v12  ;;  %v195_v28 = vpop.permute.xlu0 %194 }
  0x96   :  { %vm197_vm4 = vcmp.eq.f32.partialorder %v195_v28, 0.0 }
  0x97   :  { %v124_v17 = vmax.f32 %v120_v14, 0.0 }
  0x9c   :  { %v121_v15 = vpop.f32.mrf.mxu0 }
  0x9d   :  { %v122_v16 = vadd.f32 %v598_v13, %v121_v15 }
  0x9f   :  { %v125_v18 = vmax.f32 %v122_v16, 0.0 }
  0xa1   :  { %v126_v19 = vpack.c.bf16 %v125_v18, %v124_v17  ;;  %v274_v18 = vunpack.c.0.s8 %v273_v11 }
  0xa3   :  { %547 = vmatmul.msk.bf16.vlgmr.msra.gmra.mxu1 %vm163_vm1, %v126_v19 }
 0x120   :  { %v176_v22 = vpop.f32.mrf.mxu1 }
 0x121   :  { %v177_v23 = vadd.f32 %v599_v21, %v176_v22 }
 0x123   :  { %v202_v24 = vsel %vm196_vm2, %v177_v23, %v188_v20  ;;  %v745_v23 = vmov 1934713408   ;;  %vm353_vm2 = vcmask 48128  }
 0x124   :  { %v205_v25 = vsel %vm204_vm3, %v202_v24, -inf }
 0x125   :  { %v206_v26 = vrot.slane %v205_v25, 4 }
 0x127   :  { %v207_v27 = vmax.f32 %v205_v25, %v206_v26 }
 0x128   :  { %v178_v29 = vpop.f32.mrf.mxu1 }
 0x129   :  { %v208_v30 = vrot.slane %v207_v27, 2  ;;  %v179_v31 = vadd.f32 %v599_v21, %v178_v29 }
 0x12b   :  { %v209_v32 = vmax.f32 %v207_v27, %v208_v30  ;;  %v203_v33 = vsel %vm197_vm4, %v179_v31, %v195_v28  ;;  %vm355_vm4 = vcmask 64512  }
 0x12c   :  { %v212_v34 = vsel %vm204_vm3, %v203_v33, -inf }
 0x12d   :  { %v210_v35 = vrot.slane %v209_v32, 1  ;;  %v213_v36 = vrot.slane %v212_v34, 4 }
 0x12f   :  { %v211_v37 = vmax.f32 %v209_v32, %v210_v35  ;;  %v214_v38 = vmax.f32 %v212_v34, %v213_v36 }
 0x131   :  { %v219_v39 = vsub.f32 %v202_v24, %v211_v37  ;;  %v215_v40 = vrot.slane %v214_v38, 2  ;;  %v295_v24 = vunpack.c.l.s4 %v745_v23 }
 0x133   :  { %v221_v43 = vmul.f32 1.442695, %v219_v39  ;;  %v216_v44 = vmax.f32 %v214_v38, %v215_v40  ;;  %v296_v30 = vunpack.c.0.s8 %v295_v24 }
 0x135   :  { %601 = vpow2.f32 %v221_v43  ;;  %v217_v45 = vrot.slane %v216_v44, 1 }
 0x137   :  { %v218_v46 = vmax.f32 %v216_v44, %v217_v45 }
 0x139   :  { %v220_v47 = vsub.f32 %v203_v33, %v218_v46 }
 0x13b   :  { %v602_v48 = vpop.eup %601  ;;  %v223_v49 = vmul.f32 1.442695, %v220_v47 }
 0x13c   :  { %v225_v50 = vsel %vm204_vm3, %v602_v48, 0.0 }
 0x13d   :  { %v226_v51 = vrot.slane %v225_v50, 4  ;;  %603 = vpow2.f32 %v223_v49 }
 0x13f   :  { %v227_v52 = vadd.f32 %v226_v51, %v225_v50 }
 0x141   :  { %v228_v53 = vrot.slane %v227_v52, 2 }
 0x143   :  { %v604_v54 = vpop.eup %603  ;;  %v229_v55 = vadd.f32 %v228_v53, %v227_v52 }
 0x144   :  { %v232_v56 = vsel %vm204_vm3, %v604_v54, 0.0 }
 0x145   :  { %v230_v57 = vrot.slane %v229_v55, 1  ;;  %v233_v58 = vrot.slane %v232_v56, 4 }
 0x147   :  { %v231_v59 = vadd.f32 %v230_v57, %v229_v55  ;;  %v234_v60 = vadd.f32 %v233_v58, %v232_v56  ;;  %v79_v57 = vld [vmem:[#allocation2] sm:$0xff]  }
 0x148   :  { %v365_v58 = vunpack.c.l.bf16 %v79_v57 }
 0x149   :  { %605 = vrcp.f32 %v231_v59  ;;  %v235_v61 = vrot.slane %v234_v60, 2  ;;  %v250_v4 = vand.u32 2147483648, %v231_v59  ;;  %v248_v6 = vand.u32 2147483647, %v231_v59 }
 0x14a   :  { %vm244_vm6 = vweird.f32 %v231_v59 }
 0x14b   :  { %v236_v62 = vadd.f32 %v235_v61, %v234_v60  ;;  %v251_v9 = vor.u32 1.1754944e-38, %v250_v4  ;;  %vm249_vm8 = vcmp.eq.f32.partialorder %v248_v6, 8.507059e+37 }
 0x14d   :  { %v237_v63 = vrot.slane %v236_v62, 1 }
 0x14f   :  { %v606_v0 = vpop.eup %605  ;;  %v238_v1 = vadd.f32 %v237_v63, %v236_v62  ;;  %v366_v63 = vunpack.c.h.bf16 %v79_v57 }
 0x150   :  { %v240_v2 = vmul.f32 %v606_v0, %v231_v59  ;;  %vm245_vm5 = vweird.f32 %v606_v0 }
 0x151   :  { %607 = vrcp.f32 %v238_v1  ;;  %vm246_vm7 = vmor %vm244_vm6, %vm245_vm5  ;;  %v264_v17 = vand.u32 2147483648, %v238_v1  ;;  %v262_v20 = vand.u32 2147483647, %v238_v1  ;;  %vm258_vm10 = vweird.f32 %v238_v1 }
 0x152   :  { %v241_v3 = vsub.f32 1.0, %v240_v2  ;;  %vm357_vm5 = vcmask 80896   ;;  %vm359_vm6 = vcmask 97280  }
 0x153   :  { %v265_v22 = vor.u32 1.1754944e-38, %v264_v17  ;;  %vm263_vm12 = vcmp.eq.f32.partialorder %v262_v20, 8.507059e+37 }
 0x154   :  { %v242_v5 = vmul.f32 %v606_v0, %v241_v3 }
 0x156   :  { %v243_v7 = vadd.f32 %v606_v0, %v242_v5 }
 0x157   :  { %v608_v8 = vpop.eup %607 }
 0x158   :  { %v247_v12 = vsel %vm246_vm7, %v606_v0, %v243_v7  ;;  %v254_v13 = vmul.f32 %v608_v8, %v238_v1  ;;  %vm259_vm9 = vweird.f32 %v608_v8  ;;  %vm361_vm7 = vcmask 113664  }
 0x159   :  { %v252_v14 = vsel %vm249_vm8, %v251_v9, %v247_v12  ;;  %vm260_vm11 = vmor %vm258_vm10, %vm259_vm9 }
 0x15a   :  { %v267_v15 = vmul.f32 %v602_v48, %v252_v14  ;;  %v255_v16 = vsub.f32 1.0, %v254_v13 }
 0x15c   :  { %369 = vperm.xlu2 %596, %v267_v15   ;;  %394 = vperm.xlu1 %595, %v267_v15   ;;  %v256_v19 = vmul.f32 %v608_v8, %v255_v16  ;;  %v275_v26 = vperm.slane %v267_v15, %v274_v18  ;;  %v269_v29 = vrot.slane %v267_v15, 4 }
 0x15e   :  { %v257_v21 = vadd.f32 %v608_v8, %v256_v19  ;;  %v292_v33 = vrot.slane %v275_v26, 4  ;;  %v271_v36 = vsel %vm270_vm13, 0.0, %v269_v29  ;;  %v573_v29 = vld [vmem:[%s894_s6 + $0x8] sm:$0xff] }
 0x15f   :  { %v279_v43 = vperm.slane %v271_v36, %v274_v18 }
 0x160   :  { %v261_v25 = vsel %vm260_vm11, %v608_v8, %v257_v21 }
 0x161   :  { %v266_v27 = vsel %vm263_vm12, %v265_v22, %v261_v25  ;;  %v304_v51 = vrot.slane %v279_v43, 4  ;;  %v575_v22 = vld [vmem:[%s894_s6 + $0x18] sm:$0xff]  ;;  %v574_v25 = vld [vmem:[%s894_s6 + $0x10] sm:$0xff] }
 0x162   :  { %v268_v28 = vmul.f32 %v604_v54, %v266_v27  ;;  %473 = vmatpush.bf16.msra.mxu2 %v575_v22 }
 0x164   :  { %v280_v31 = vrot.slane %v268_v28, 4  ;;  %374 = vperm.xlu2 %596, %v268_v28   ;;  %398 = vperm.xlu1 %595, %v268_v28   ;;  %v285_v32 = vperm.slane %v268_v28, %v274_v18 }
 0x166   :  { %v290_v34 = vrot.slane %v285_v32, 4  ;;  %v293_v35 = vsel %vm270_vm13, %v285_v32, %v292_v33  ;;  %v281_v37 = vsel %vm270_vm13, 0.0, %v280_v31  ;;  %474 = vmatpush.bf16.msra.mxu2 %v574_v25 }
 0x167   :  { %v301_v38 = vperm.slane %v293_v35, %v296_v30  ;;  %v289_v39 = vperm.slane %v281_v37, %v274_v18  ;;  %v572_v37 = vld [vmem:[%s894_s6] sm:$0xff]  ;;  %s753_s6 = smov [#allocation9]  }
 0x168   :  { %v291_v40 = vsel %vm270_vm13, %v290_v34, %v275_v26  ;;  %s500_s0 = sshll.u32 %s753_s6, 4  ;;  %s501_s0 = int_to_ptr.vmem [resolvable:$true] %s500_s0 }
 0x169   :  { %v316_v41 = vrot.slane %v301_v38, 4  ;;  %v844_v42 = vperm.slane %v291_v40, %v296_v30  ;;  %v302_v44 = vrot.slane %v289_v39, 4  ;;  %v305_v52 = vsel %vm270_vm13, %v289_v39, %v304_v51 }
 0x16a   :  { %v313_v54 = vperm.slane %v305_v52, %v296_v30  ;;  %475 = vmatpush.bf16.msra.mxu2 %v573_v29 }
 0x16b   :  { %v314_v45 = vrot.slane %v844_v42, 4  ;;  %v303_v46 = vsel %vm270_vm13, %v302_v44, %v279_v43  ;;  %v849_v47 = vsel %vm270_vm13, 0.0, %v316_v41 }
 0x16c   :  { %327 = vrot.lane.b32.xlu2 %v301_v38, %s740_s20  ;;  %v309_v48 = vperm.slane %v303_v46, %v296_v30  ;;  %v320_v55 = vrot.slane %v313_v54, 4 }
 0x16d   :  { %v315_v49 = vsel %vm270_vm13, 0.0, %v314_v45 }
 0x16e   :  { %323 = vrot.lane.b32.xlu1 %v315_v49, %s746_s3  ;;  %v318_v50 = vrot.slane %v309_v48, 4  ;;  %v321_v56 = vsel %vm270_vm13, 0.0, %v320_v55  ;;  %476 = vmatpush.bf16.msra.mxu2 %v572_v37  ;;  %v600_v55 = vld [vmem:[%s895_s7] ss:$0 sm:$0xff] }
 0x170   :  { %v319_v53 = vsel %vm270_vm13, 0.0, %v318_v50 }
 0x174   :  { %339 = vrot.lane.b32.xlu2 %v319_v53, %s747_s5 }
 0x176   :  { %335 = vrot.lane.b32.xlu1 %v309_v48, %s748_s13 }
 0x17e   :  { %347 = vrot.lane.b32.xlu1 %v321_v56, %s749_s14 }
 0x1b6   :  { %v370_v59 = vpop.permute.xlu2 %369 }
 0x1b7   :  { %v377_v60 = vmul.f32 %v370_v59, %v365_v58 }
 0x1b9   :  { %v379_v61 = vsel %vm106_vm0, %v377_v60, 0.0 }
 0x1ba   :  { %v380_v62 = vrot.slane %v379_v61, 4 }
 0x1bc   :  { %v381_v0 = vadd.f32 %v380_v62, %v379_v61 }
 0x1be   :  { %v375_v1 = vpop.permute.xlu2 %374  ;;  %v382_v3 = vrot.slane %v381_v0, 2 }
 0x1bf   :  { %v378_v2 = vmul.f32 %v375_v1, %v366_v63 }
 0x1c0   :  { %v383_v6 = vadd.f32 %v382_v3, %v381_v0 }
 0x1c1   :  { %v386_v4 = vsel %vm106_vm0, %v378_v2, 0.0 }
 0x1c2   :  { %v387_v5 = vrot.slane %v386_v4, 4  ;;  %v384_v9 = vrot.slane %v383_v6, 1 }
 0x1c4   :  { %v388_v7 = vadd.f32 %v387_v5, %v386_v4  ;;  %v385_v12 = vadd.f32 %v384_v9, %v383_v6 }
 0x1c6   :  { %v389_v8 = vrot.slane %v388_v7, 2  ;;  %v328_v43 = vpop.permute.xlu2 %327 }
 0x1c8   :  { %v390_v10 = vadd.f32 %v389_v8, %v388_v7 }
 0x1ca   :  { %v391_v11 = vrot.slane %v390_v10, 1 }
 0x1cc   :  { %v392_v13 = vadd.f32 %v391_v11, %v390_v10 }
 0x1ce   :  { %v395_v14 = vpop.permute.xlu1 %394  ;;  %v420_v15 = vsel %vm419_vm14, %v392_v13, %v385_v12  ;;  %v340_v50 = vpop.permute.xlu2 %339 }
 0x1cf   :  { %v401_v16 = vmul.f32 %v395_v14, %v365_v58 }
 0x1d1   :  { %v403_v17 = vsel %vm106_vm0, %v401_v16, 0.0 }
 0x1d2   :  { %v404_v18 = vrot.slane %v403_v17, 4 }
 0x1d4   :  { %v405_v19 = vadd.f32 %v404_v18, %v403_v17 }
 0x1d6   :  { %v399_v20 = vpop.permute.xlu1 %398  ;;  %v406_v23 = vrot.slane %v405_v19, 2 }
 0x1d7   :  { %v402_v21 = vmul.f32 %v399_v20, %v366_v63 }
 0x1d8   :  { %v407_v27 = vadd.f32 %v406_v23, %v405_v19 }
 0x1d9   :  { %v410_v24 = vsel %vm106_vm0, %v402_v21, 0.0 }
 0x1da   :  { %v411_v26 = vrot.slane %v410_v24, 4  ;;  %v408_v31 = vrot.slane %v407_v27, 1 }
 0x1dc   :  { %v412_v28 = vadd.f32 %v411_v26, %v410_v24  ;;  %v409_v34 = vadd.f32 %v408_v31, %v407_v27 }
 0x1de   :  { %v413_v30 = vrot.slane %v412_v28, 2 }
 0x1e0   :  { %v414_v32 = vadd.f32 %v413_v30, %v412_v28  ;;  %v324_v38 = vpop.permute.xlu1 %323 }
 0x1e1   :  { %v350_v44 = vsel %vm204_vm3, %v844_v42, %v324_v38 }
 0x1e2   :  { %v415_v33 = vrot.slane %v414_v32, 1 }
 0x1e4   :  { %v416_v35 = vadd.f32 %v415_v33, %v414_v32 }
 0x1e6   :  { %v424_v36 = vsel %vm419_vm14, %v416_v35, %v409_v34 }
 0x1e7   :  { %425 = vrot.lane.b32.xlu0 %v424_v36, %s750_s21 }
 0x1e8   :  { %v336_v45 = vpop.permute.xlu1 %335 }
 0x1ef   :  { %331 = vrot.lane.b32.xlu0 %v849_v47, %s751_s1  ;;  %v352_v47 = vsel %vm351_vm15, %v350_v44, %v328_v43 }
 0x1f0   :  { %v348_v42 = vpop.permute.xlu1 %347 }
 0x1f7   :  { %343 = vrot.lane.b32.xlu0 %v313_v54, %s752_s22 }
 0x259   :  { %v426_v39 = vpop.permute.xlu0 %425 }
 0x25a   :  { %v428_v40 = vsel %vm106_vm0, %v420_v15, %v426_v39  ;;  %vm363_vm0 = vcmask 123904  }
 0x25b   :  { %v429_v41 = vpack.c.bf16 %v428_v40, %v428_v40 }
 0x25d   :  { %564 = vmatmul.msk.bf16.vlgmr.msra.gmra.mxu2 %vm163_vm1, %v429_v41  ;;  %vm482_vm1 = vcmask 517120  }
 0x261   :  { %v332_v46 = vpop.permute.xlu0 %331 }
 0x262   :  { %v354_v48 = vsel %vm353_vm2, %v352_v47, %v332_v46 }
 0x263   :  { %v356_v49 = vsel %vm355_vm4, %v354_v48, %v336_v45 }
 0x264   :  { %v358_v51 = vsel %vm357_vm5, %v356_v49, %v340_v50 }
 0x269   :  { %v344_v52 = vpop.permute.xlu0 %343 }
 0x26a   :  { %v360_v53 = vsel %vm359_vm6, %v358_v51, %v344_v52 }
 0x26b   :  { %v362_v54 = vsel %vm361_vm7, %v360_v53, %v348_v42 }
 0x26c   :  { %364 = vst.msk [vmem:[#allocation9] sm:$0x3] %vm363_vm0, %v362_v54 }
 0x26d   :  { %505 = dma.vmem_to_hbm [thread:$0]  %s501_s0, 32, %s503_s26, [#allocation10]  }
 0x2e0   :  { %v478_v56 = vpop.f32.mrf.mxu2 }
 0x2e1   :  { %v479_v57 = vadd.f32 %v600_v55, %v478_v56 }
 0x2e3   :  { %483 = vst.msk [vmem:[#allocation8] sm:$0x3] %vm482_vm1, %v479_v57 }
 0x2e4   :  { %494 = dma.vmem_to_hbm [thread:$0]  %s490_s30, 32, %s492_s4, [#allocation4]  }
 0x2e8   :  { %v480_v58 = vpop.f32.mrf.mxu2 }
 0x2e9   :  { %733 = dma.done.wait [#allocation4], 32  }
 0x2ea   :  { %734 = vsyncadd [#allocation4], 4294967264 }
 0x2eb   :  { %735 = dma.done.wait [#allocation10], 32  }
 0x2ec   :  { %736 = vsyncadd [#allocation10], 4294967264 }
 0x2ed   :  { %514 = vsyncpa [#allocation3], 1 }
 0x2ee   :  { %515 = vsyncpa [#allocation6], 1 }
 0x2ef   :  { %516 = vsyncpa [#allocation4], 1 }
 0x2f0   :  { %517 = vsyncpa [#allocation10], 1 }

</bundles_post_ra>
